<compile_context>
chip_gen: v7x
topology: tpu7x:2x2x1
jax: 0.10.0
libtpu: 0.0.40
codegen_flags: <defaults>
</compile_context>

<pallas_src>
import functools

import jax
import jax.numpy as jnp
from jax import lax
from jax.experimental import pallas as pl
from jax.experimental.pallas import tpu as pltpu

LANES = 128
ACC_ROWS = 8            # one f32 vreg of sublanes per-core in the partial-sum output
_SMALL_N = 8 * LANES    # below this a fused XLA op beats kernel launch/priming cost


def _margin_ranking_kernel(margin_ref, pos_ref, neg_ref, out_ref, acc_ref, *,
                           blocks_per_core, tile_rows, full_rows, tail_lanes):
    """Grid = (core_split, row_blocks). Accumulate hinge sums per lane, per core."""
    c = pl.program_id(0)
    j = pl.program_id(1)

    @pl.when(j == 0)
    def _init():
        acc_ref[...] = jnp.zeros_like(acc_ref)

    dtype = pos_ref.dtype
    margin = margin_ref[0].astype(dtype)
    # Hinge in the input dtype (bf16 stays packed 16x128/vreg on v6e/v7x);
    # accumulation below is always f32.
    hinge = jnp.maximum(pos_ref[...] - neg_ref[...] + margin, jnp.zeros((), dtype))

    # Unclamped position of this grid step, in row units (int32-safe).  The
    # index_map clamps the DMA so it never runs off the array; masking here uses
    # the *unclamped* position so redundant steps contribute exactly zero.
    row_start = (c * blocks_per_core + j) * tile_rows
    needs_mask = row_start + tile_rows > full_rows   # block touches pad/garbage

    @pl.when(jnp.logical_not(needs_mask))
    def _accumulate_fast():
        acc_ref[...] += jnp.sum(hinge.astype(jnp.float32), axis=0, keepdims=True)

    @pl.when(needs_mask)
    def _accumulate_masked():
        # Only tail block(s) pay for the iotas.  Pad zeros (which would each
        # contribute `margin`) and out-of-bounds garbage (possibly NaN) are
        # zeroed before the reduction.
        rows = lax.broadcasted_iota(jnp.int32, hinge.shape, 0) + row_start
        lanes = lax.broadcasted_iota(jnp.int32, hinge.shape, 1)
        valid = (rows < full_rows) | ((rows == full_rows) & (lanes < tail_lanes))
        masked = jnp.where(valid, hinge.astype(jnp.float32), 0.0)
        acc_ref[...] += jnp.sum(masked, axis=0, keepdims=True)

    @pl.when(j == pl.num_programs(1) - 1)
    def _finalize():
        out_ref[...] = jnp.zeros_like(out_ref)
        out_ref[0:1, :] = acc_ref[...]


def margin_ranking_loss(positive_scores, negative_scores, margin, *,
                        max_tile_rows=None):
    """Pallas equivalent of nn.MarginRankingLoss(margin)(pos, neg, target=-1)."""
    pos = jnp.asarray(positive_scores).reshape(-1)
    neg = jnp.asarray(negative_scores).reshape(-1)
    if pos.dtype != neg.dtype or pos.dtype not in (jnp.bfloat16, jnp.float32):
        pos = pos.astype(jnp.float32)
        neg = neg.astype(jnp.float32)
    n = pos.shape[0]
    margin_f32 = jnp.asarray(margin, jnp.float32)

    # Tiny inputs: fused XLA elementwise+reduce beats the kernel's fixed launch
    # and pipeline-priming cost on every generation.
    if n < _SMALL_N:
        diff = pos.astype(jnp.float32) - neg.astype(jnp.float32)
        return jnp.mean(jnp.maximum(diff + margin_f32, 0.0))

    itemsize = jnp.dtype(pos.dtype).itemsize
    full_rows, tail_lanes = divmod(n, LANES)
    rows_total = full_rows + (1 if tail_lanes else 0)
    padded = rows_total * LANES
    # Pad only the sub-128 lane tail; no full tile-multiple copy of the inputs.
    if padded != n:
        pos = jnp.pad(pos, (0, padded - n))
        neg = jnp.pad(neg, (0, padded - n))
    pos2d = pos.reshape(rows_total, LANES)
    neg2d = neg.reshape(rows_total, LANES)

    if max_tile_rows is None:
        # ~1 MiB per input block: 4096 rows bf16 / 2048 rows f32.
        max_tile_rows = 4096 if pos.dtype == jnp.bfloat16 else 2048
    tile_rows = min(max_tile_rows, rows_total)
    nblocks = -(-rows_total // tile_rows)

    # Leading "parallel" axis splits row blocks across (up to) 2 TensorCores
    # (v7x megacore); on 1-TC chips it is just a sequential outer loop.
    # TODO(synk): query the TensorCore count at trace time instead of assuming 2.
    num_splits = 2 if nblocks >= 2 else 1
    blocks_per_core = -(-nblocks // num_splits)

    def tile_map(c, j):
        # Clamp so redundant trailing steps re-read the last valid block instead
        # of DMAing out of bounds; the kernel masks their contribution to zero.
        return (jnp.minimum(c * blocks_per_core + j, nblocks - 1), 0)

    kernel = functools.partial(
        _margin_ranking_kernel,
        blocks_per_core=blocks_per_core,
        tile_rows=tile_rows,
        full_rows=full_rows,
        tail_lanes=tail_lanes,
    )

    partials = pl.pallas_call(
        kernel,
        out_shape=jax.ShapeDtypeStruct((num_splits * ACC_ROWS, LANES), jnp.float32),
        grid_spec=pltpu.PrefetchScalarGridSpec(
            num_scalar_prefetch=0,
            grid=(num_splits, blocks_per_core),
            in_specs=[
                pl.BlockSpec(memory_space=pltpu.MemorySpace.SMEM),   # margin (1,)
                pl.BlockSpec((tile_rows, LANES), tile_map),          # pos
                pl.BlockSpec((tile_rows, LANES), tile_map),          # neg
            ],
            out_specs=pl.BlockSpec((ACC_ROWS, LANES), lambda c, j: (c, 0)),
            scratch_shapes=[pltpu.VMEM((1, LANES), jnp.float32)],
        ),
        compiler_params=pltpu.CompilerParams(
            dimension_semantics=("parallel", "arbitrary"),
        ),
        cost_estimate=pl.CostEstimate(
            flops=4 * n,
            transcendentals=0,
            bytes_accessed=2 * n * itemsize + num_splits * ACC_ROWS * LANES * 4 + 4,
        ),
    )(margin_f32.reshape(1), pos2d, neg2d)

    return jnp.sum(partials) / jnp.float32(n)


def margin_ranking_loss_ref(pos, neg, margin):
    # Pure-JAX reference (matches torch.nn.MarginRankingLoss with target=-1).
    pos = jnp.asarray(pos, jnp.float32)
    neg = jnp.asarray(neg, jnp.float32)
    return jnp.mean(jnp.maximum((pos - neg) + margin, 0.0))


if __name__ == "__main__":
    key = jax.random.PRNGKey(0)
    k1, k2, k3, k4, k5, k6 = jax.random.split(key, 6)
    margin = 1.0

    # 1) Lane-aligned length, small tiles to exercise multi-block + 2-way core
    #    split + the clamped redundant trailing step.  98304 score pairs.
    n1 = 768 * LANES
    pos1 = jax.random.normal(k1, (n1,), dtype=jnp.float32)
    neg1 = jax.random.normal(k2, (n1,), dtype=jnp.float32)
    out1 = jax.block_until_ready(margin_ranking_loss(pos1, neg1, margin, max_tile_rows=256))
    ref1 = margin_ranking_loss_ref(pos1, neg1, margin)
    assert jnp.allclose(out1, ref1, rtol=1e-5, atol=1e-6), (out1, ref1)

    # 2) Ragged length (not a multiple of 128), default tiling: exercises the
    #    lane-tail pad and the masked final (single) block.
    n2 = 7000
    pos2 = jax.random.normal(k3, (n2,), dtype=jnp.float32)
    neg2 = jax.random.normal(k4, (n2,), dtype=jnp.float32)
    out2 = jax.block_until_ready(margin_ranking_loss(pos2, neg2, margin))
    ref2 = margin_ranking_loss_ref(pos2, neg2, margin)
    assert jnp.allclose(out2, ref2, rtol=1e-5, atol=1e-6), (out2, ref2)

    # 3) bf16 inputs: bf16 hinge math in-kernel, f32 accumulation.
    n3 = 512 * LANES + 40
    pos3 = jax.random.normal(k5, (n3,), dtype=jnp.float32).astype(jnp.bfloat16)
    neg3 = jax.random.normal(k6, (n3,), dtype=jnp.float32).astype(jnp.bfloat16)
    out3 = jax.block_until_ready(margin_ranking_loss(pos3, neg3, margin, max_tile_rows=256))
    ref3 = margin_ranking_loss_ref(pos3, neg3, margin)
    assert jnp.allclose(out3, ref3, rtol=2e-2, atol=2e-3), (out3, ref3)

    # 4) Tiny input takes the fused-XLA fallback path.
    pos4 = jax.random.normal(k1, (200,), dtype=jnp.float32)
    neg4 = jax.random.normal(k2, (200,), dtype=jnp.float32)
    out4 = jax.block_until_ready(margin_ranking_loss(pos4, neg4, margin))
    ref4 = margin_ranking_loss_ref(pos4, neg4, margin)
    assert jnp.allclose(out4, ref4, rtol=1e-6, atol=1e-6), (out4, ref4)

    print("KERNEL_OK")
</pallas_src>

<mosaic_0001>
module attributes {stable_mosaic.version = 11 : i64} {
  func.func @_margin_ranking_kernel(%arg0: i32, %arg1: i32, %arg2: memref<1xf32, #tpu.memory_space<smem>>, %arg3: memref<256x128xf32, #tpu.memory_space<vmem>>, %arg4: memref<256x128xf32, #tpu.memory_space<vmem>>, %arg5: memref<8x128xf32, #tpu.memory_space<vmem>>, %arg6: memref<1x128xf32, #tpu.memory_space<vmem>>) attributes {dimension_semantics = [#tpu.dimension_semantics<parallel>, #tpu.dimension_semantics<arbitrary>], iteration_bounds = array<i64: 2, 2>, scalar_prefetch = 0 : i64, scratch_operands = 1 : i64, tpu.core_type = #tpu.core_type<tc>, window_params = [{transform_indices = @transform_0, window_bounds = array<i64: 1>}, {transform_indices = @transform_1, window_bounds = array<i64: 256, 128>}, {transform_indices = @transform_2, window_bounds = array<i64: 256, 128>}, {transform_indices = @transform_3, window_bounds = array<i64: 8, 128>}]} {
    %c0_i32 = arith.constant 0 : i32
    %0 = arith.cmpi eq, %arg1, %c0_i32 : i32
    %1 = arith.extui %0 : i1 to i32
    %c0_i32_0 = arith.constant 0 : i32
    %2 = arith.cmpi ne, %1, %c0_i32_0 : i32
    scf.if %2 {
      %cst_9 = arith.constant 0.000000e+00 : f32
      %24 = vector.broadcast %cst_9 : f32 to vector<1x128xf32>
      %c0_10 = arith.constant 0 : index
      %c0_11 = arith.constant 0 : index
      %25 = vector.load %arg6[%c0_10, %c0_11] : memref<1x128xf32, #tpu.memory_space<vmem>>, vector<1x128xf32>
      tpu.vector_store %arg6[%c0_10, %c0_11], %24 {strides = array<i32>} : memref<1x128xf32, #tpu.memory_space<vmem>>, vector<1x128xf32>,
    } else {
    }
    %c0 = arith.constant 0 : index
    %3 = memref.load %arg2[%c0] : memref<1xf32, #tpu.memory_space<smem>>
    %c0_1 = arith.constant 0 : index
    %c0_2 = arith.constant 0 : index
    %4 = vector.load %arg3[%c0_1, %c0_2] : memref<256x128xf32, #tpu.memory_space<vmem>>, vector<256x128xf32>
    %c0_3 = arith.constant 0 : index
    %c0_4 = arith.constant 0 : index
    %5 = vector.load %arg4[%c0_3, %c0_4] : memref<256x128xf32, #tpu.memory_space<vmem>>, vector<256x128xf32>
    %6 = arith.subf %4, %5 : vector<256x128xf32>
    %7 = vector.broadcast %3 : f32 to vector<256x128xf32>
    %8 = arith.addf %6, %7 : vector<256x128xf32>
    %cst = arith.constant 0.000000e+00 : f32
    %9 = vector.broadcast %cst : f32 to vector<256x128xf32>
    %10 = arith.maximumf %8, %9 : vector<256x128xf32>
    %c2_i32 = arith.constant 2 : i32
    %11 = arith.muli %arg0, %c2_i32 : i32
    %12 = arith.addi %11, %arg1 : i32
    %c256_i32 = arith.constant 256 : i32
    %13 = arith.muli %12, %c256_i32 : i32
    %c256_i32_5 = arith.constant 256 : i32
    %14 = arith.addi %13, %c256_i32_5 : i32
    %c768_i32 = arith.constant 768 : i32
    %15 = arith.cmpi sgt, %14, %c768_i32 : i32
    %true = arith.constant true
    %16 = arith.xori %15, %true : i1
    %17 = arith.extui %16 : i1 to i32
    %c0_i32_6 = arith.constant 0 : i32
    %18 = arith.cmpi ne, %17, %c0_i32_6 : i32
    scf.if %18 {
      %c0_9 = arith.constant 0 : index
      %c0_10 = arith.constant 0 : index
      %24 = vector.load %arg6[%c0_9, %c0_10] : memref<1x128xf32, #tpu.memory_space<vmem>>, vector<1x128xf32>
      %cst_11 = arith.constant dense<0.000000e+00> : vector<128xf32>
      %25 = vector.multi_reduction <add>, %10, %cst_11 [0] : vector<256x128xf32> to vector<128xf32>
      %26 = vector.shape_cast %25 : vector<128xf32> to vector<1x128xf32>
      %27 = arith.addf %24, %26 : vector<1x128xf32>
      %c0_12 = arith.constant 0 : index
      %c0_13 = arith.constant 0 : index
      %28 = vector.load %arg6[%c0_12, %c0_13] : memref<1x128xf32, #tpu.memory_space<vmem>>, vector<1x128xf32>
      tpu.vector_store %arg6[%c0_12, %c0_13], %27 {strides = array<i32>} : memref<1x128xf32, #tpu.memory_space<vmem>>, vector<1x128xf32>,
    } else {
    }
    %19 = arith.extui %15 : i1 to i32
    %c0_i32_7 = arith.constant 0 : i32
    %20 = arith.cmpi ne, %19, %c0_i32_7 : i32
    scf.if %20 {
      %24 = tpu.iota {dimensions = array<i32: 0>} : vector<256x128xi32>
      %25 = vector.broadcast %13 : i32 to vector<256x128xi32>
      %26 = arith.addi %24, %25 : vector<256x128xi32>
      %27 = tpu.iota {dimensions = array<i32: 1>} : vector<256x128xi32>
      %c768_i32_9 = arith.constant 768 : i32
      %28 = vector.broadcast %c768_i32_9 : i32 to vector<256x128xi32>
      %29 = arith.cmpi slt, %26, %28 : vector<256x128xi32>
      %c768_i32_10 = arith.constant 768 : i32
      %30 = vector.broadcast %c768_i32_10 : i32 to vector<256x128xi32>
      %31 = arith.cmpi eq, %26, %30 : vector<256x128xi32>
      %c0_i32_11 = arith.constant 0 : i32
      %32 = vector.broadcast %c0_i32_11 : i32 to vector<256x128xi32>
      %33 = arith.cmpi slt, %27, %32 : vector<256x128xi32>
      %34 = arith.andi %31, %33 : vector<256x128xi1>
      %35 = arith.ori %29, %34 : vector<256x128xi1>
      %cst_12 = arith.constant 0.000000e+00 : f32
      %36 = vector.broadcast %cst_12 : f32 to vector<256x128xf32>
      %37 = arith.select %35, %10, %36 : vector<256x128xi1>, vector<256x128xf32>
      %c0_13 = arith.constant 0 : index
      %c0_14 = arith.constant 0 : index
      %38 = vector.load %arg6[%c0_13, %c0_14] : memref<1x128xf32, #tpu.memory_space<vmem>>, vector<1x128xf32>
      %cst_15 = arith.constant dense<0.000000e+00> : vector<128xf32>
      %39 = vector.multi_reduction <add>, %37, %cst_15 [0] : vector<256x128xf32> to vector<128xf32>
      %40 = vector.shape_cast %39 : vector<128xf32> to vector<1x128xf32>
      %41 = arith.addf %38, %40 : vector<1x128xf32>
      %c0_16 = arith.constant 0 : index
      %c0_17 = arith.constant 0 : index
      %42 = vector.load %arg6[%c0_16, %c0_17] : memref<1x128xf32, #tpu.memory_space<vmem>>, vector<1x128xf32>
      tpu.vector_store %arg6[%c0_16, %c0_17], %41 {strides = array<i32>} : memref<1x128xf32, #tpu.memory_space<vmem>>, vector<1x128xf32>,
    } else {
    }
    %c1_i32 = arith.constant 1 : i32
    %21 = arith.cmpi eq, %arg1, %c1_i32 : i32
    %22 = arith.extui %21 : i1 to i32
    %c0_i32_8 = arith.constant 0 : i32
    %23 = arith.cmpi ne, %22, %c0_i32_8 : i32
    scf.if %23 {
      %cst_9 = arith.constant 0.000000e+00 : f32
      %24 = vector.broadcast %cst_9 : f32 to vector<8x128xf32>
      %c0_10 = arith.constant 0 : index
      %c0_11 = arith.constant 0 : index
      %25 = vector.load %arg5[%c0_10, %c0_11] : memref<8x128xf32, #tpu.memory_space<vmem>>, vector<8x128xf32>
      tpu.vector_store %arg5[%c0_10, %c0_11], %24 {strides = array<i32>} : memref<8x128xf32, #tpu.memory_space<vmem>>, vector<8x128xf32>,
      %c0_12 = arith.constant 0 : index
      %c0_13 = arith.constant 0 : index
      %26 = vector.load %arg6[%c0_12, %c0_13] : memref<1x128xf32, #tpu.memory_space<vmem>>, vector<1x128xf32>
      %c0_14 = arith.constant 0 : index
      %c0_15 = arith.constant 0 : index
      %27 = vector.load %arg5[%c0_14, %c0_15] : memref<8x128xf32, #tpu.memory_space<vmem>>, vector<1x128xf32>
      tpu.vector_store %arg5[%c0_14, %c0_15], %26 {strides = array<i32>} : memref<8x128xf32, #tpu.memory_space<vmem>>, vector<1x128xf32>,
    } else {
    }
    return
  }
  func.func @transform_0(%arg0: i32, %arg1: i32) -> i32 {
    %c0_i32 = arith.constant 0 : i32
    %c0_i32_0 = arith.constant 0 : i32
    return %c0_i32 : i32
  }
  func.func @transform_1(%arg0: i32, %arg1: i32) -> (i32, i32) {
    %c2_i32 = arith.constant 2 : i32
    %0 = arith.muli %arg0, %c2_i32 : i32
    %1 = arith.addi %0, %arg1 : i32
    %c2_i32_0 = arith.constant 2 : i32
    %2 = arith.minsi %1, %c2_i32_0 : i32
    %c0_i32 = arith.constant 0 : i32
    %c0_i32_1 = arith.constant 0 : i32
    return %2, %c0_i32 : i32, i32
  }
  func.func @transform_2(%arg0: i32, %arg1: i32) -> (i32, i32) {
    %c2_i32 = arith.constant 2 : i32
    %0 = arith.muli %arg0, %c2_i32 : i32
    %1 = arith.addi %0, %arg1 : i32
    %c2_i32_0 = arith.constant 2 : i32
    %2 = arith.minsi %1, %c2_i32_0 : i32
    %c0_i32 = arith.constant 0 : i32
    %c0_i32_1 = arith.constant 0 : i32
    return %2, %c0_i32 : i32, i32
  }
  func.func @transform_3(%arg0: i32, %arg1: i32) -> (i32, i32) {
    %c0_i32 = arith.constant 0 : i32
    %c0_i32_0 = arith.constant 0 : i32
    return %arg0, %c0_i32 : i32, i32
  }
}

</mosaic_0001>

<bundles_post_ra>
// kernel: tpu_custom_call.1
= control target key start
LH: loop header
LB: loop body
LE: loop exit
PB: predicated region body
PF: predicated region fallthrough
CT: control target
= control target key end

     0   :  { %s2057_s0 = inlined_call_operand.<no memory space> [shape: f32[1], index: 0, kind: input, shape index: {}]   ;;  %s2058_s1 = inlined_call_operand.hbm [shape: f32[768,128], index: 1, kind: input, shape index: {}]   ;;  %s2059_s2 = inlined_call_operand.hbm [shape: f32[768,128], index: 2, kind: input, shape index: {}]   ;;  %s2060_s3 = inlined_call_operand.hbm [shape: f32[16,128], index: 3, kind: output, shape index: {}]  }
   0x1   :  { %2080 = sst [smem:[#allocation17_spill]] %s2058_s1 }
   0x2   :  { %8 = sst [smem:[#allocation3]] %s2057_s0 }
   0x3   :  { %9 = vsyncpa [#allocation5], 0 }
   0x4   :  { %11 = vsyncpa [#allocation5 + $0x1], 0 }
   0x5   :  { %12 = vsyncpa [#allocation8], 0 }
   0x6   :  { %14 = vsyncpa [#allocation8 + $0x1], 0 }
   0x7   :  { %15 = vsyncpa [#allocation6], 0 }
   0x8   :  { %17 = vsyncpa [#allocation6 + $0x1], 0  ;;  %s1250_s14 = smov 0   ;;  %s1252_s15 = smov 0  }
   0x9   :  { %s1254_s16 = smov 0   ;;  %s1256_s17 = smov 0  }
   0xa   :  { %s1258_s18 = smov 0   ;;  %s1260_s19 = smov 0  }
   0xb   :  { %s1262_s20 = smov 0   ;;  %s1264_s0 = smov 0  }
   0xc   :  { %s1266_s21 = smov 0   ;;  %s1268_s22 = smov 0  }
   0xd   :  { %s1270_s23 = smov 0  }
   0xe LB: > { %2081 = sst [smem:[#allocation13_spill]] %s1210_s21  ;;  %s889_s24 = sadd.s32 4294967295, %s1218_s23   ;;  %s1218_s23 = sphi %s1270_s23, %s23_s23   ;;  %s1214_s22 = sphi %s1268_s22, %s2126_s22   ;;  %s1210_s21 = sphi %s1266_s21, %s2125_s21   ;;  %s1206_s0 = sphi %s1264_s0, %s2124_s0   ;;  %s1202_s20 = sphi %s1262_s20, %s2123_s20   ;;  %s1198_s19 = sphi %s1260_s19, %s2132_s19   ;;  %s1194_s18 = sphi %s1258_s18, %s2131_s18   ;;  %s1190_s17 = sphi %s1256_s17, %s2130_s17   ;;  %s1186_s16 = sphi %s1254_s16, %s2129_s16   ;;  %s1182_s15 = sphi %s1252_s15, %s2128_s15   ;;  %s1178_s14 = sphi %s1250_s14, %s2127_s14  }
   0xf   : > { %2082 = sst [smem:[#allocation14_spill]] %s1214_s22  ;;  %s890_s25 = sadd.s32 4294967294, %s1218_s23  }
  0x10   : > { %s32_s26 = sadd.s32 1, %s1210_s21  ;;  %s35_s27 = sadd.s32 1, %s1214_s22 }
  0x11   : > { %p33_p0 = scmp.ge.s32.totalorder %s32_s26, 2  ;;  %s891_s28 = sshll.u32 %s1214_s22, 1 }
  0x12   : > { %s61_s29 = sadd.s32 %s1210_s21, %s891_s28  ;;  %s71_s30 = sadd.s32 1, %s1198_s19 }
  0x13   : > { %s2134_s26 = smov (%p33_p0, %s32_s26), 0  ;;  %s2136_s27 = smov (!%p33_p0, %s35_s27), %s1214_s22 }
  0x14   : > { %2083 = sst [smem:[#allocation15_spill]] %s2134_s26  ;;  %p62_p1 = scmp.lt.s32.totalorder %s61_s29, 2 }
  0x15   : > { %p78_p2 = scmp.ne.s32.totalorder %s1198_s19, %s1194_s18  ;;  %p37_p3 = scmp.ge.s32.totalorder %s2136_s27, 2 }
  0x16   : > { %p79_p4 = scmp.eq.s32.totalorder %s1218_s23, 0  ;;  %s2138_s29 = smov (!%p62_p1, %s61_s29), 2 }
  0x17   : > { %s2140_s27 = smov (%p37_p3, %s2136_s27), 0  ;;  %p84_p6 = scmp.ne.s32.totalorder %s1194_s18, %s1190_s17 }
  0x18   : > { %2084 = sst [smem:[#allocation16_spill]] %s2140_s27  ;;  %p1322_p5 = por %p79_p4, %p78_p2 }
  0x19   : > { %s892_s5 = sshll.u32 %s2140_s27, 1  ;;  %p85_p7 = scmp.eq.s32.totalorder %s889_s24, 0 }
  0x1a   : > { %s65_s6 = sadd.s32 %s892_s5, %s2134_s26  ;;  %s128_s7 = ssub.s32 %s1214_s22, %s2140_s27 }
  0x1b   : > { %p66_p8 = scmp.lt.s32.totalorder %s65_s6, 2  ;;  %p1334_p9 = por %p85_p7, %p84_p6 }
  0x1c   : > { %p129_p10 = scmp.eq.s32.totalorder %s128_s7, 0  ;;  %s131_s9 = sadd.s32 1, %s1186_s16 }
  0x1d   : > { %s2086_s8 = scalar_select %p1334_p9, 1, 0 }
  0x1e   : > { %s2142_s6 = smov (!%p66_p8, %s65_s6), 2  ;;  %p141_p11 = scmp.ne.s32.totalorder %s1186_s16, %s1182_s15 }
  0x1f   : > { %s1340_s10 = scalar_select %p129_p10, %s1186_s16, %s131_s9  }
  0x20   : > { %s68_s11 = ssub.s32 %s2138_s29, %s2142_s6  ;;  %p142_p13 = scmp.eq.s32.totalorder %s889_s24, 3 }
  0x21   : > { %p69_p12 = scmp.eq.s32.totalorder %s68_s11, 0  ;;  %p147_p0 = scmp.ne.s32.totalorder %s1182_s15, %s1178_s14 }
  0x22   : > { %p148_p1 = scmp.eq.s32.totalorder %s890_s25, 3  ;;  %p1354_p2 = por %p142_p13, %p141_p11 }
  0x23   : > { %s1352_s12 = scalar_select %p69_p12, %s1198_s19, %s71_s30  }
  0x24   : > { %s2087_s13 = scalar_select %p1354_p2, 1, 0 }
  0x25   : > { %p1358_p3 = por %p148_p1, %p147_p0  ;;  %p938_p4 = scmp.lt.s32.totalorder %s1218_s23, 4 }
  0x26   : > { %s1364_s28 = sand.u32 1, %s1198_s19   ;;  %s2063_s24 = sshll.u32 %s2138_s29, 12 }
  0x27   : > { %s2088_s17 = scalar_select %p1358_p3, 1, 0 }
  0x28   : > { %s2062_s5 = sshll.u32 %s1364_s28, 8  ;;  %s2089_s1 = sld [smem:[#allocation17_spill]] }
  0x29   : > { %s175_s7 = scalar_lea.vmem [#allocation4], %s2062_s5  ;;  %p1379_p6 = pnand %p938_p4, %p1322_p5 }
  0x2a   : > { %s186_s9 = sshll.u32 %s175_s7, 4  ;;  %s1383_s9 = int_to_ptr.vmem [resolvable:$true] %s186_s9 }
  0x2b   : > { %p1034_p8 = pneg %p1379_p6 }
  0x2e   : > { %s1373_s6 = scalar_lea.hbm %s2089_s1, %s2063_s24  ;;  %s1037_s4 = scalar_lea.hbm %s2089_s1, 12288 }
  0x2f   : > { %s1032_s25 = scalar_lea.hbm %s1373_s6, 4096  ;;  %p1038_p5 = scmp.lt.u32.totalorder %s1373_s6, %s2089_s1 }
  0x30   : > { %p1033_p7 = scmp.ne.s32.totalorder %s1373_s6, %s1032_s25  ;;  %p1039_p12 = scmp.lt.u32.totalorder %s1037_s4, %s1032_s25 }
  0x31   : > { %p1041_p0 = scmp.lt.u32.totalorder %s1032_s25, %s1373_s6 }
  0x32   : > { %p1035_p10 = pnand %p1034_p8, %p1033_p7  ;;  %p1040_p13 = por %p1039_p12, %p1038_p5 }
  0x34   : > { %p1036_p11 = pneg %p1035_p10  ;;  %p1042_p1 = por %p1041_p0, %p1040_p13 }
  0x36   : > { %p1043_p4 = pnand %p1042_p1, %p1036_p11 }
  0x38   : > { %1046 = shalt.err (!%p1043_p4)
}
  0x39   : > { %s1047_s27 = scalar_lea.vmem %s1383_s9, 4096  ;;  %s1220_s30 = smov [#allocation4]  }
  0x3a   : > { %p1048_p7 = scmp.ne.s32.totalorder %s1383_s9, %s1047_s27  ;;  %s1052_s7 = sshll.u32 %s1220_s30, 4  ;;  %s1053_s7 = int_to_ptr.vmem [resolvable:$false] %s1052_s7 }
  0x3b   : > { %s1054_s24 = scalar_lea.vmem %s1053_s7, 8192  ;;  %p1055_p2 = scmp.lt.s32.totalorder %s1383_s9, %s1053_s7 }
  0x3c   : > { %p1050_p10 = pnand %p1048_p7, %p1034_p8  ;;  %p1056_p5 = scmp.lt.s32.totalorder %s1054_s24, %s1047_s27 }
  0x3e   : > { %p1051_p3 = pneg %p1050_p10  ;;  %p1057_p12 = por %p1056_p5, %p1055_p2 }
  0x40   : > { %p1058_p13 = pnand %p1057_p12, %p1051_p3 }
  0x42   : > { %1061 = shalt.err (!%p1058_p13)
}
  0x43   : > { %s1221_s5 = smov 128   ;;  %s1222_s25 = smov 8  }
  0x44   : > { %s2091_s27 = scalar_lea.sflag [#allocation5], %s1364_s28  ;;  %p905_p2 = scmp.ge.s32.totalorder %s1218_s23, 1 }
  0x45   : > { %930 = dma.hbm_to_vmem [thread:$0]  (!%p1379_p6), %s1373_s6, 4096, %s1383_s9, %s2091_s27, %s1221_s5, %s1221_s5, %s1222_s25  }
  0x46   : > { %p219_p3 = scmp.lt.s32.totalorder %s1218_s23, 5  ;;  %s2093_s30 = sshll.u32 %s2138_s29, 12 }
  0x47   : > { %s1427_s1 = scalar_lea.hbm %s2059_s2, %s2093_s30  ;;  %s2094_s26 = sshll.u32 %s1364_s28, 8 }
  0x48   : > { %p1418_p11 = pnand %p905_p2, %p219_p3  ;;  %s200_s22 = scalar_lea.vmem [#allocation7], %s2094_s26 }
  0x49   : > { %s211_s21 = sshll.u32 %s200_s22, 4  ;;  %s197_s6 = scalar_lea.sflag [#allocation8], %s1364_s28  ;;  %s1431_s21 = int_to_ptr.vmem [resolvable:$true] %s211_s21 }
  0x4a   : > { %s1062_s9 = scalar_lea.hbm %s1427_s1, 4096  ;;  %s1067_s30 = scalar_lea.hbm %s2059_s2, 12288 }
  0x4b   : > { %p1063_p0 = scmp.ne.s32.totalorder %s1427_s1, %s1062_s9  ;;  %p1068_p7 = scmp.lt.u32.totalorder %s1427_s1, %s2059_s2 }
  0x4c   : > { %p1069_p10 = scmp.lt.u32.totalorder %s1067_s30, %s1062_s9  ;;  %p1071_p12 = scmp.lt.u32.totalorder %s1062_s9, %s1427_s1 }
  0x4d   : > { %p1065_p1 = pnand %p1063_p0, %p1034_p8 }
  0x4e   : > { %p1070_p5 = por %p1069_p10, %p1068_p7 }
  0x4f   : > { %p1066_p4 = pneg %p1065_p1 }
  0x50   : > { %p1072_p13 = por %p1071_p12, %p1070_p5 }
  0x52   : > { %p1073_p2 = pnand %p1072_p13, %p1066_p4 }
  0x54   : > { %1076 = shalt.err (!%p1073_p2)
}
  0x55   : > { %s1077_s22 = scalar_lea.vmem %s1431_s21, 4096  ;;  %s1223_s26 = smov [#allocation7]  }
  0x56   : > { %p1078_p3 = scmp.ne.s32.totalorder %s1431_s21, %s1077_s22  ;;  %s1082_s29 = sshll.u32 %s1223_s26, 4  ;;  %s1083_s29 = int_to_ptr.vmem [resolvable:$false] %s1082_s29 }
  0x57   : > { %s1084_s27 = scalar_lea.vmem %s1083_s29, 8192  ;;  %p1085_p9 = scmp.lt.s32.totalorder %s1431_s21, %s1083_s29 }
  0x58   : > { %p1080_p0 = pnand %p1078_p3, %p1034_p8  ;;  %p1086_p7 = scmp.lt.s32.totalorder %s1084_s27, %s1077_s22 }
  0x5a   : > { %p1081_p1 = pneg %p1080_p0  ;;  %p1087_p10 = por %p1086_p7, %p1085_p9 }
  0x5c   : > { %p1088_p5 = pnand %p1087_p10, %p1081_p1 }
  0x5e   : > { %1091 = shalt.err (!%p1088_p5)
}
  0x5f   : > { %933 = dma.hbm_to_vmem [thread:$0]  (!%p1379_p6), %s1427_s1, 4096, %s1431_s21, %s197_s6, %s1221_s5, %s1221_s5, %s1222_s25  }
  0x60   : > { %223 = sbr.rel (%p1418_p11) target bundleno = 346 (0x15a), region = 32  ;;  %s225_s9 = sand.u32 (!%p1418_p11), 1, %s1194_s18  }
  0x61   : > { %s906_s30 = sshll.u32 (!%p1418_p11), %s225_s9, 8  ;;  %s226_s7 = scalar_lea.sflag (!%p1418_p11), [#allocation5], %s225_s9 }
  0x62   : > { %s1465_s24 = scalar_lea.vmem (!%p1418_p11), [#allocation4], %s906_s30  ;;  %p2095_p9 = scmp.ne.s32.totalorder (!%p1418_p11), %s2086_s8, 0 }
  0x67   : > { %1165 = dma.done.wait (%p2095_p9), %s226_s7, 4096  }
  0x68   : > { %1167 = vsyncadd (%p2095_p9), %s226_s7, 4294963200  ;;  %s235_s28 = scalar_lea.sflag [#allocation8], %s225_s9  ;;  %s1471_s11 = scalar_lea.vmem [#allocation7], %s906_s30 }
  0x69   : > { %1169 = dma.done.wait (%p2095_p9), %s235_s28, 4096  }
  0x6a   : > { %1171 = vsyncadd (%p2095_p9), %s235_s28, 4294963200  ;;  %s263_s1 = sand.u32 1, %s1182_s15   ;;  %p909_p6 = scmp.ne.s32.totalorder %s1202_s20, 0 }
  0x6b   : > { %s908_s21 = sshll.u32 %s263_s1, 3  ;;  %v1224_v0 = vmov (!%p909_p6), 0.0  }
  0x6c   : > { %s1480_s5 = scalar_lea.vmem [#allocation9], %s908_s21  ;;  %279 = sbr.rel (%p909_p6) target bundleno = 115 (0x73), region = 44  ;;  %280 = vst [vmem:[#allocation2] sm:$0x1] (!%p909_p6), %v1224_v0 }
  0x73 PF: > { %s910_s8 = sshll.u32 %s1206_s0, 1  ;;  %s281_s4 = sld [smem:[#allocation3]]  ;;  %v282_v1 = vld [vmem:[%s1465_s24] sm:$0xff]  ;;  %v283_v2 = vld [vmem:[%s1465_s24 + $0x8] sm:$0xff]  ;;  %v284_v3 = vld [vmem:[%s1465_s24 + $0x10] sm:$0xff] }
  0x74   : > { %s1485_s25 = sadd.s32 %s1202_s20, %s910_s8  ;;  %v1496_v4 = vld [vmem:[%s1465_s24 + $0x18] sm:$0xff]  ;;  %v1499_v5 = vld [vmem:[%s1465_s24 + $0x20] sm:$0xff]  ;;  %v1502_v6 = vld [vmem:[%s1465_s24 + $0x28] sm:$0xff] }
  0x75   : > { %s911_s6 = sshll.u32 %s1485_s25, 8  ;;  %v1505_v7 = vld [vmem:[%s1465_s24 + $0x30] sm:$0xff]  ;;  %v1508_v8 = vld [vmem:[%s1465_s24 + $0x38] sm:$0xff]  ;;  %v1511_v9 = vld [vmem:[%s1465_s24 + $0x40] sm:$0xff] }
  0x76   : > { %s1490_s22 = sadd.s32 256, %s911_s6  ;;  %v1514_v10 = vld [vmem:[%s1465_s24 + $0x48] sm:$0xff]  ;;  %v1517_v11 = vld [vmem:[%s1465_s24 + $0x50] sm:$0xff]  ;;  %v1520_v12 = vld [vmem:[%s1465_s24 + $0x58] sm:$0xff] }
  0x77   : > { %v1523_v13 = vld [vmem:[%s1465_s24 + $0x60] sm:$0xff]  ;;  %v1529_v16 = vld [vmem:[%s1465_s24 + $0x68] sm:$0xff]  ;;  %v1532_v17 = vld [vmem:[%s1465_s24 + $0x70] sm:$0xff]  ;;  %p912_p8 = scmp.gt.s32.totalorder %s1490_s22, 768 }
  0x78   : > { %v314_v14 = vld [vmem:[%s1471_s11] sm:$0xff]  ;;  %v1535_v18 = vld [vmem:[%s1465_s24 + $0x78] sm:$0xff]  ;;  %v315_v19 = vld [vmem:[%s1471_s11 + $0x8] sm:$0xff] }
  0x79   : > { %v1526_v15 = vstv %s281_s4  ;;  %v316_v20 = vld [vmem:[%s1471_s11 + $0x10] sm:$0xff]  ;;  %v317_v21 = vld [vmem:[%s1471_s11 + $0x18] sm:$0xff]  ;;  %v346_v22 = vsub.f32 %v282_v1, %v314_v14  ;;  %v1541_v23 = vld [vmem:[%s1465_s24 + $0x80] sm:$0xff]  ;;  %v347_v29 = vsub.f32 %v283_v2, %v315_v19 }
  0x7a   : > { %v1544_v24 = vld [vmem:[%s1465_s24 + $0x88] sm:$0xff]  ;;  %v1547_v25 = vld [vmem:[%s1465_s24 + $0x90] sm:$0xff]  ;;  %v318_v26 = vld [vmem:[%s1471_s11 + $0x20] sm:$0xff]  ;;  %v348_v30 = vsub.f32 %v284_v3, %v316_v20  ;;  %v349_v31 = vsub.f32 %v1496_v4, %v317_v21 }
  0x7b   : > { %v319_v27 = vld [vmem:[%s1471_s11 + $0x28] sm:$0xff]  ;;  %v1552_v28 = vld [vmem:[%s1471_s11 + $0x30] sm:$0xff]  ;;  %v1556_v32 = vld [vmem:[%s1465_s24 + $0x98] sm:$0xff]  ;;  %v350_v38 = vsub.f32 %v1499_v5, %v318_v26  ;;  %v1578_v41 = vadd.f32 %v1526_v15, %v346_v22  ;;  %v1605_v51 = vadd.f32 %v1526_v15, %v347_v29 }
  0x7c   : > { %v1559_v33 = vld [vmem:[%s1465_s24 + $0xa0] sm:$0xff]  ;;  %v1562_v34 = vld [vmem:[%s1465_s24 + $0xa8] sm:$0xff]  ;;  %v1565_v35 = vld [vmem:[%s1471_s11 + $0x38] sm:$0xff]  ;;  %v351_v39 = vsub.f32 %v1502_v6, %v319_v27  ;;  %v352_v40 = vsub.f32 %v1505_v7, %v1552_v28  ;;  %v1626_v61 = vadd.f32 %v1526_v15, %v348_v30  ;;  %v1644_v7 = vadd.f32 %v1526_v15, %v349_v31 }
  0x7d   : > { %v1568_v36 = vld [vmem:[%s1471_s11 + $0x40] sm:$0xff]  ;;  %v1571_v37 = vld [vmem:[%s1471_s11 + $0x48] sm:$0xff]  ;;  %v1581_v42 = vld [vmem:[%s1465_s24 + $0xb0] sm:$0xff]  ;;  %v353_v48 = vsub.f32 %v1508_v8, %v1565_v35 }
  0x7e   : > { %v1584_v43 = vld [vmem:[%s1465_s24 + $0xb8] sm:$0xff]  ;;  %v1587_v44 = vld [vmem:[%s1465_s24 + $0xc0] sm:$0xff]  ;;  %v1590_v45 = vld [vmem:[%s1471_s11 + $0x50] sm:$0xff]  ;;  %v354_v49 = vsub.f32 %v1511_v9, %v1568_v36  ;;  %v355_v50 = vsub.f32 %v1514_v10, %v1571_v37  ;;  %v1672_v30 = vadd.f32 %v1526_v15, %v352_v40 }
  0x7f   : > { %v1593_v46 = vld [vmem:[%s1471_s11 + $0x58] sm:$0xff]  ;;  %v1596_v47 = vld [vmem:[%s1471_s11 + $0x60] sm:$0xff]  ;;  %v1608_v52 = vld [vmem:[%s1465_s24 + $0xc8] sm:$0xff]  ;;  %v356_v58 = vsub.f32 %v1517_v11, %v1590_v45  ;;  %v1681_v37 = vadd.f32 %v1526_v15, %v353_v48 }
  0x80   : > { %v1611_v53 = vld [vmem:[%s1465_s24 + $0xd0] sm:$0xff]  ;;  %v1614_v54 = vld [vmem:[%s1465_s24 + $0xd8] sm:$0xff]  ;;  %v327_v55 = vld [vmem:[%s1471_s11 + $0x68] sm:$0xff]  ;;  %v357_v59 = vsub.f32 %v1520_v12, %v1593_v46  ;;  %v358_v60 = vsub.f32 %v1523_v13, %v1596_v47  ;;  %v1691_v45 = vadd.f32 %v1526_v15, %v355_v50 }
  0x81   : > { %v328_v56 = vld [vmem:[%s1471_s11 + $0x70] sm:$0xff]  ;;  %v329_v57 = vld [vmem:[%s1471_s11 + $0x78] sm:$0xff]  ;;  %v1629_v62 = vld [vmem:[%s1465_s24 + $0xe0] sm:$0xff]  ;;  %v359_v4 = vsub.f32 %v1529_v16, %v327_v55  ;;  %v1654_v16 = vadd.f32 %v1526_v15, %v350_v38  ;;  %v1694_v46 = vadd.f32 %v1526_v15, %v356_v58 }
  0x82   : > { %v1632_v63 = vld [vmem:[%s1465_s24 + $0xe8] sm:$0xff]  ;;  %v1635_v0 = vld [vmem:[%s1465_s24 + $0xf0] sm:$0xff]  ;;  %v330_v1 = vld [vmem:[%s1471_s11 + $0x80] sm:$0xff]  ;;  %v360_v5 = vsub.f32 %v1532_v17, %v328_v56  ;;  %v361_v6 = vsub.f32 %v1535_v18, %v329_v57  ;;  %v1697_v47 = vadd.f32 %v1526_v15, %v357_v59  ;;  %v1700_v48 = vadd.f32 %v1526_v15, %v358_v60 }
  0x83   : > { %v331_v2 = vld [vmem:[%s1471_s11 + $0x88] sm:$0xff]  ;;  %v332_v3 = vld [vmem:[%s1471_s11 + $0x90] sm:$0xff]  ;;  %v313_v8 = vld [vmem:[%s1465_s24 + $0xf8] sm:$0xff]  ;;  %v362_v12 = vsub.f32 %v1541_v23, %v330_v1  ;;  %v1663_v23 = vadd.f32 %v1526_v15, %v351_v39 }
  0x84   : > { %v333_v9 = vld [vmem:[%s1471_s11 + $0x98] sm:$0xff]  ;;  %v334_v10 = vld [vmem:[%s1471_s11 + $0xa0] sm:$0xff]  ;;  %v335_v11 = vld [vmem:[%s1471_s11 + $0xa8] sm:$0xff]  ;;  %v363_v13 = vsub.f32 %v1544_v24, %v331_v2  ;;  %v364_v14 = vsub.f32 %v1547_v25, %v332_v3 }
  0x85   : > { %v336_v17 = vld [vmem:[%s1471_s11 + $0xb0] sm:$0xff]  ;;  %v337_v18 = vld [vmem:[%s1471_s11 + $0xb8] sm:$0xff]  ;;  %v338_v19 = vld [vmem:[%s1471_s11 + $0xc0] sm:$0xff]  ;;  %v365_v20 = vsub.f32 %v1556_v32, %v333_v9  ;;  %v366_v21 = vsub.f32 %v1559_v33, %v334_v10  ;;  %v367_v22 = vsub.f32 %v1562_v34, %v335_v11  ;;  %v1712_v50 = vadd.f32 %v1526_v15, %v362_v12 }
  0x86   : > { %v339_v24 = vld [vmem:[%s1471_s11 + $0xc8] sm:$0xff]  ;;  %v340_v25 = vld [vmem:[%s1471_s11 + $0xd0] sm:$0xff]  ;;  %v341_v26 = vld [vmem:[%s1471_s11 + $0xd8] sm:$0xff]  ;;  %v368_v27 = vsub.f32 %v1581_v42, %v336_v17  ;;  %v369_v28 = vsub.f32 %v1584_v43, %v337_v18  ;;  %v370_v29 = vsub.f32 %v1587_v44, %v338_v19  ;;  %v1688_v43 = vadd.f32 %v1526_v15, %v354_v49 }
  0x87   : > { %v342_v31 = vld [vmem:[%s1471_s11 + $0xe0] sm:$0xff]  ;;  %v343_v32 = vld [vmem:[%s1471_s11 + $0xe8] sm:$0xff]  ;;  %v344_v33 = vld [vmem:[%s1471_s11 + $0xf0] sm:$0xff]  ;;  %v371_v34 = vsub.f32 %v1608_v52, %v339_v24  ;;  %v372_v35 = vsub.f32 %v1611_v53, %v340_v25  ;;  %v373_v36 = vsub.f32 %v1614_v54, %v341_v26  ;;  %v1703_v52 = vadd.f32 %v1526_v15, %v359_v4 }
  0x88   : > { %v345_v38 = vld [vmem:[%s1471_s11 + $0xf8] sm:$0xff]  ;;  %v374_v39 = vsub.f32 %v1629_v62, %v342_v31  ;;  %v375_v42 = vsub.f32 %v1632_v63, %v343_v32  ;;  %v376_v40 = vsub.f32 %v1635_v0, %v344_v33  ;;  %v1706_v53 = vadd.f32 %v1526_v15, %v360_v5 }
  0x89   : > { %v377_v44 = vsub.f32 %v313_v8, %v345_v38  ;;  %v1709_v49 = vadd.f32 %v1526_v15, %v361_v6  ;;  %v1715_v54 = vadd.f32 %v1526_v15, %v363_v13  ;;  %v1718_v55 = vadd.f32 %v1526_v15, %v364_v14 }
  0x8a   : > { %v1721_v56 = vadd.f32 %v1526_v15, %v365_v20  ;;  %v1724_v57 = vadd.f32 %v1526_v15, %v366_v21  ;;  %v1727_v58 = vadd.f32 %v1526_v15, %v367_v22  ;;  %v1730_v59 = vadd.f32 %v1526_v15, %v368_v27 }
  0x8b   : > { %v1733_v60 = vadd.f32 %v1526_v15, %v369_v28  ;;  %v1736_v62 = vadd.f32 %v1526_v15, %v370_v29  ;;  %v1739_v63 = vadd.f32 %v1526_v15, %v371_v34  ;;  %v1742_v0 = vadd.f32 %v1526_v15, %v372_v35 }
  0x8c   : > { %v1745_v1 = vadd.f32 %v1526_v15, %v373_v36  ;;  %v1748_v2 = vadd.f32 %v1526_v15, %v374_v39  ;;  %v1751_v3 = vadd.f32 %v1526_v15, %v375_v42  ;;  %v1754_v4 = vadd.f32 %v1526_v15, %v376_v40 }
  0x8d   : > { %v1757_v5 = vadd.f32 %v1526_v15, %v377_v44  ;;  %v411_v6 = vmax.f32 %v1578_v41, 0.0  ;;  %v2069_v8 = vmax.f32 %v1605_v51, 0.0  ;;  %v413_v9 = vmax.f32 %v1626_v61, 0.0  ;;  %451 = sbr.rel (%p912_p8) target bundleno = 224 (0xe0), region = 48 }
  0x8e   : > { %v414_v10 = vmax.f32 %v1644_v7, 0.0  ;;  %v415_v11 = vmax.f32 %v1654_v16, 0.0  ;;  %v416_v12 = vmax.f32 %v1663_v23, 0.0  ;;  %v417_v13 = vmax.f32 %v1672_v30, 0.0 }
  0x8f   : > { %v418_v14 = vmax.f32 %v1681_v37, 0.0  ;;  %v419_v17 = vmax.f32 %v1688_v43, 0.0  ;;  %v420_v15 = vmax.f32 %v1691_v45, 0.0  ;;  %v421_v18 = vmax.f32 %v1694_v46, 0.0 }
  0x90   : > { %v422_v19 = vmax.f32 %v1697_v47, 0.0  ;;  %v423_v20 = vmax.f32 %v1700_v48, 0.0  ;;  %v424_v21 = vmax.f32 %v1703_v52, 0.0  ;;  %v425_v22 = vmax.f32 %v1706_v53, 0.0 }
  0x91   : > { %v2079_v24 = vmax.f32 %v1709_v49, 0.0  ;;  %v2078_v25 = vmax.f32 %v1712_v50, 0.0  ;;  %v2077_v26 = vmax.f32 %v1715_v54, 0.0  ;;  %v2070_v27 = vmax.f32 %v1718_v55, 0.0 }
  0x92   : > { %v2071_v28 = vmax.f32 %v1721_v56, 0.0  ;;  %v2072_v29 = vmax.f32 %v1724_v57, 0.0  ;;  %v2073_v31 = vmax.f32 %v1727_v58, 0.0  ;;  %v2074_v32 = vmax.f32 %v1730_v59, 0.0 }
  0x93   : > { %v2075_v33 = vmax.f32 %v1733_v60, 0.0  ;;  %v2076_v34 = vmax.f32 %v1736_v62, 0.0  ;;  %v453_v35 = vadd.f32 (!%p912_p8), %v2069_v8, %v411_v6 }
  0x95   : > { %v454_v36 = vadd.f32 %v453_v35, %v413_v9 }
  0x97   : > { %v455_v39 = vadd.f32 %v454_v36, %v414_v10 }
  0x99   : > { %v456_v42 = vadd.f32 %v455_v39, %v415_v11 }
  0x9b   : > { %v457_v44 = vadd.f32 %v456_v42, %v416_v12 }
  0x9d   : > { %v458_v40 = vadd.f32 %v457_v44, %v417_v13 }
  0x9f   : > { %v459_v38 = vadd.f32 %v458_v40, %v418_v14 }
  0xa1   : > { %v460_v8 = vadd.f32 %v459_v38, %v419_v17 }
  0xa3   : > { %v461_v35 = vadd.f32 %v460_v8, %v420_v15 }
  0xa5   : > { %v462_v36 = vadd.f32 %v461_v35, %v421_v18 }
  0xa7   : > { %v463_v39 = vadd.f32 %v462_v36, %v422_v19 }
  0xa9   : > { %v464_v42 = vadd.f32 %v463_v39, %v423_v20 }
  0xab   : > { %v465_v44 = vadd.f32 %v464_v42, %v424_v21 }
  0xad   : > { %v466_v40 = vadd.f32 %v465_v44, %v425_v22 }
  0xaf   : > { %v467_v38 = vadd.f32 %v466_v40, %v2079_v24 }
  0xb1   : > { %v468_v8 = vadd.f32 %v467_v38, %v2078_v25 }
  0xb3   : > { %v469_v35 = vadd.f32 %v468_v8, %v2077_v26 }
  0xb5   : > { %v470_v36 = vadd.f32 %v469_v35, %v2070_v27  ;;  %v2096_v35 = vmax.f32 %v1739_v63, 0.0 }
  0xb7   : > { %v471_v39 = vadd.f32 %v470_v36, %v2071_v28  ;;  %v2097_v36 = vmax.f32 %v1742_v0, 0.0 }
  0xb9   : > { %v472_v42 = vadd.f32 %v471_v39, %v2072_v29  ;;  %v2098_v39 = vmax.f32 %v1745_v1, 0.0 }
  0xbb   : > { %v473_v44 = vadd.f32 %v472_v42, %v2073_v31  ;;  %v2099_v42 = vmax.f32 %v1748_v2, 0.0 }
  0xbd   : > { %v474_v40 = vadd.f32 %v473_v44, %v2074_v32  ;;  %v2100_v44 = vmax.f32 %v1751_v3, 0.0 }
  0xbf   : > { %v475_v38 = vadd.f32 %v474_v40, %v2075_v33  ;;  %v2101_v40 = vmax.f32 %v1754_v4, 0.0 }
  0xc1   : > { %v476_v8 = vadd.f32 %v475_v38, %v2076_v34  ;;  %v2102_v38 = vmax.f32 %v1757_v5, 0.0 }
  0xc3   : > { %v477_v27 = vadd.f32 %v476_v8, %v2096_v35 }
  0xc5   : > { %v478_v28 = vadd.f32 %v477_v27, %v2097_v36  ;;  %v452_v36 = vld [vmem:[#allocation2] sm:$0x1] }
  0xc7   : > { %v479_v29 = vadd.f32 %v478_v28, %v2098_v39 }
  0xc9   : > { %v480_v31 = vadd.f32 %v479_v29, %v2099_v42 }
  0xcb   : > { %v481_v32 = vadd.f32 %v480_v31, %v2100_v44 }
  0xcd   : > { %v482_v33 = vadd.f32 %v481_v32, %v2101_v40 }
  0xcf   : > { %v483_v34 = vadd.f32 %v482_v33, %v2102_v38 }
  0xd1   : > { %v484_v26 = vrot.slane %v483_v34, 4 }
  0xd3   : > { %v485_v8 = vadd.f32 %v484_v26, %v483_v34 }
  0xd5   : > { %v486_v35 = vrot.slane %v485_v8, 2 }
  0xd7   : > { %v487_v25 = vadd.f32 %v486_v35, %v485_v8 }
  0xd9   : > { %v488_v27 = vrot.slane %v487_v25, 1 }
  0xdb   : > { %v489_v24 = vadd.f32 %v488_v27, %v487_v25 }
  0xdd   : > { %v490_v28 = vadd.f32 %v489_v24, %v452_v36 }
  0xdf   : > { %491 = vst [vmem:[#allocation2] sm:$0x1] %v490_v28 }
  0xe0 PF: > { %p913_p11 = scmp.le.s32.totalorder %s1490_s22, 768 }
  0xe1   : > { %v495_v29 = vlaneseq (!%p913_p11)  ;;  %v1862_v33 = vstv (!%p913_p11), %s911_s6  ;;  %v2103_v27 = vmax.f32 (!%p913_p11), %v1605_v51, 0.0 }
  0xe2   : > { %494 = sbr.rel (%p913_p11) target bundleno = 312 (0x138), region = 52 }
  0xe3   : > { %v1857_v31 = vshrl.u32 (!%p913_p11), %v495_v29, 7 }
  0xe5   : > { %v497_v32 = vadd.s32 (!%p913_p11), 8, %v1857_v31  ;;  %v498_v26 = vadd.s32 (!%p913_p11), 16, %v1857_v31  ;;  %v499_v34 = vadd.s32 (!%p913_p11), 24, %v1857_v31  ;;  %v529_v24 = vadd.s32 (!%p913_p11), %v1862_v33, %v1857_v31 }
  0xe6   : > { %v500_v39 = vadd.s32 (!%p913_p11), 32, %v1857_v31  ;;  %v501_v44 = vadd.s32 (!%p913_p11), 40, %v1857_v31  ;;  %v502_v38 = vadd.s32 (!%p913_p11), 48, %v1857_v31  ;;  %v503_v28 = vadd.s32 (!%p913_p11), 56, %v1857_v31 }
  0xe7   : > { %v530_v25 = vadd.s32 (!%p913_p11), %v1862_v33, %v497_v32  ;;  %v531_v42 = vadd.s32 (!%p913_p11), %v1862_v33, %v498_v26  ;;  %v532_v40 = vadd.s32 (!%p913_p11), %v1862_v33, %v499_v34  ;;  %vm563_vm0 = vcmp.lt.s32.totalorder (!%p913_p11), %v529_v24, 768 }
  0xe8   : > { %v533_v8 = vadd.s32 (!%p913_p11), %v1862_v33, %v500_v39  ;;  %v692_v35 = vsel (!%p913_p11), %vm563_vm0, %v411_v6, 0.0  ;;  %v534_v29 = vadd.s32 (!%p913_p11), %v1862_v33, %v501_v44  ;;  %v504_v26 = vadd.s32 (!%p913_p11), 64, %v1857_v31 }
  0xe9   : > { %vm564_vm1 = vcmp.lt.s32.totalorder %v530_v25, 768  ;;  %vm565_vm2 = vcmp.lt.s32.totalorder %v531_v42, 768  ;;  %vm566_vm3 = vcmp.lt.s32.totalorder %v532_v40, 768  ;;  %v535_v34 = vadd.s32 %v1862_v33, %v502_v38 }
  0xea   : > { %v693_v36 = vsel %vm564_vm1, %v2103_v27, 0.0  ;;  %v694_v32 = vsel %vm565_vm2, %v413_v9, 0.0  ;;  %vm567_vm4 = vcmp.lt.s32.totalorder %v533_v8, 768  ;;  %v695_v41 = vsel %vm566_vm3, %v414_v10, 0.0 }
  0xeb   : > { %v725_v24 = vadd.f32 %v693_v36, %v692_v35  ;;  %v505_v51 = vadd.s32 72, %v1857_v31  ;;  %v536_v6 = vadd.s32 %v1862_v33, %v503_v28  ;;  %vm568_vm5 = vcmp.lt.s32.totalorder %v534_v29, 768 }
  0xec   : > { %v696_v39 = vsel %vm567_vm4, %v415_v11, 0.0  ;;  %v506_v61 = vadd.s32 80, %v1857_v31  ;;  %v537_v9 = vadd.s32 %v1862_v33, %v504_v26  ;;  %vm569_vm6 = vcmp.lt.s32.totalorder %v535_v34, 768 }
  0xed   : > { %v726_v25 = vadd.f32 %v725_v24, %v694_v32  ;;  %v697_v44 = vsel %vm568_vm5, %v416_v12, 0.0  ;;  %v507_v7 = vadd.s32 88, %v1857_v31  ;;  %v538_v10 = vadd.s32 %v1862_v33, %v505_v51 }
  0xee   : > { %vm570_vm7 = vcmp.lt.s32.totalorder %v536_v6, 768  ;;  %v698_v38 = vsel %vm569_vm6, %v417_v13, 0.0  ;;  %v508_v16 = vadd.s32 96, %v1857_v31  ;;  %v539_v11 = vadd.s32 %v1862_v33, %v506_v61 }
  0xef   : > { %v727_v42 = vadd.f32 %v726_v25, %v695_v41  ;;  %vm571_vm8 = vcmp.lt.s32.totalorder %v537_v9, 768  ;;  %v699_v35 = vsel %vm570_vm7, %v418_v14, 0.0  ;;  %v509_v23 = vadd.s32 104, %v1857_v31 }
  0xf0   : > { %v540_v12 = vadd.s32 %v1862_v33, %v507_v7  ;;  %vm572_vm9 = vcmp.lt.s32.totalorder %v538_v10, 768  ;;  %v700_v36 = vsel %vm571_vm8, %v419_v17, 0.0  ;;  %v510_v30 = vadd.s32 112, %v1857_v31 }
  0xf1   : > { %v728_v40 = vadd.f32 %v727_v42, %v696_v39  ;;  %v541_v13 = vadd.s32 %v1862_v33, %v508_v16  ;;  %vm573_vm10 = vcmp.lt.s32.totalorder %v539_v11, 768  ;;  %v701_v29 = vsel %vm572_vm9, %v420_v15, 0.0 }
  0xf2   : > { %v511_v37 = vadd.s32 120, %v1857_v31  ;;  %v542_v14 = vadd.s32 %v1862_v33, %v509_v23  ;;  %vm574_vm11 = vcmp.lt.s32.totalorder %v540_v12, 768  ;;  %v702_v26 = vsel %vm573_vm10, %v421_v18, 0.0 }
  0xf3   : > { %v729_v8 = vadd.f32 %v728_v40, %v697_v44  ;;  %v512_v43 = vadd.s32 128, %v1857_v31  ;;  %v543_v17 = vadd.s32 %v1862_v33, %v510_v30  ;;  %vm575_vm12 = vcmp.lt.s32.totalorder %v541_v13, 768 }
  0xf4   : > { %v703_v24 = vsel %vm574_vm11, %v422_v19, 0.0  ;;  %v513_v45 = vadd.s32 136, %v1857_v31  ;;  %v544_v15 = vadd.s32 %v1862_v33, %v511_v37  ;;  %vm576_vm13 = vcmp.lt.s32.totalorder %v542_v14, 768 }
  0xf5   : > { %v730_v27 = vadd.f32 %v729_v8, %v698_v38  ;;  %v704_v51 = vsel %vm575_vm12, %v423_v20, 0.0  ;;  %v514_v46 = vadd.s32 144, %v1857_v31  ;;  %v545_v18 = vadd.s32 %v1862_v33, %v512_v43 }
  0xf6   : > { %vm577_vm14 = vcmp.lt.s32.totalorder %v543_v17, 768  ;;  %v705_v25 = vsel %vm576_vm13, %v424_v21, 0.0  ;;  %v515_v47 = vadd.s32 152, %v1857_v31  ;;  %v546_v19 = vadd.s32 %v1862_v33, %v513_v45 }
  0xf7   : > { %v731_v28 = vadd.f32 %v730_v27, %v699_v35  ;;  %vm578_vm15 = vcmp.lt.s32.totalorder %v544_v15, 768  ;;  %v706_v61 = vsel %vm577_vm14, %v425_v22, 0.0  ;;  %v516_v48 = vadd.s32 160, %v1857_v31 }
  0xf8   : > { %v547_v20 = vadd.s32 %v1862_v33, %v514_v46  ;;  %vm579_vm0 = vcmp.lt.s32.totalorder %v545_v18, 768  ;;  %v2104_v42 = vmax.f32 %v1709_v49, 0.0  ;;  %v517_v52 = vadd.s32 168, %v1857_v31 }
  0xf9   : > { %v732_v32 = vadd.f32 %v731_v28, %v700_v36  ;;  %v548_v21 = vadd.s32 %v1862_v33, %v515_v47  ;;  %vm580_vm1 = vcmp.lt.s32.totalorder %v546_v19, 768  ;;  %v2105_v10 = vmax.f32 %v1712_v50, 0.0 }
  0xfa   : > { %v707_v44 = vsel %vm578_vm15, %v2104_v42, 0.0  ;;  %v518_v53 = vadd.s32 176, %v1857_v31  ;;  %v549_v22 = vadd.s32 %v1862_v33, %v516_v48  ;;  %vm581_vm2 = vcmp.lt.s32.totalorder %v547_v20, 768 }
  0xfb   : > { %v733_v34 = vadd.f32 %v732_v32, %v701_v29  ;;  %v708_v40 = vsel %vm579_vm0, %v2105_v10, 0.0  ;;  %v2106_v16 = vmax.f32 %v1715_v54, 0.0  ;;  %v519_v49 = vadd.s32 184, %v1857_v31 }
  0xfc   : > { %v550_v8 = vadd.s32 %v1862_v33, %v517_v52  ;;  %vm582_vm3 = vcmp.lt.s32.totalorder %v548_v21, 768  ;;  %v2107_v23 = vmax.f32 %v1718_v55, 0.0  ;;  %v520_v50 = vadd.s32 192, %v1857_v31 }
  0xfd   : > { %v734_v41 = vadd.f32 %v733_v34, %v702_v26  ;;  %v709_v11 = vsel %vm580_vm1, %v2106_v16, 0.0  ;;  %v551_v27 = vadd.s32 %v1862_v33, %v518_v53  ;;  %vm583_vm4 = vcmp.lt.s32.totalorder %v549_v22, 768 }
  0xfe   : > { %v710_v12 = vsel %vm581_vm2, %v2107_v23, 0.0  ;;  %v2108_v30 = vmax.f32 %v1721_v56, 0.0  ;;  %v521_v54 = vadd.s32 200, %v1857_v31  ;;  %v552_v28 = vadd.s32 %v1862_v33, %v519_v49 }
  0xff   : > { %v735_v6 = vadd.f32 %v734_v41, %v703_v24  ;;  %vm584_vm5 = vcmp.lt.s32.totalorder %v550_v8, 768  ;;  %v2109_v37 = vmax.f32 %v1724_v57, 0.0  ;;  %v522_v55 = vadd.s32 208, %v1857_v31 }
 0x100   : > { %v711_v13 = vsel %vm582_vm3, %v2108_v30, 0.0  ;;  %v553_v32 = vadd.s32 %v1862_v33, %v520_v50  ;;  %vm585_vm6 = vcmp.lt.s32.totalorder %v551_v27, 768  ;;  %v2110_v43 = vmax.f32 %v1727_v58, 0.0  ;;  %v724_v30 = vld [vmem:[#allocation2] sm:$0x1] }
 0x101   : > { %v736_v39 = vadd.f32 %v735_v6, %v704_v51  ;;  %v712_v14 = vsel %vm583_vm4, %v2109_v37, 0.0  ;;  %v523_v56 = vadd.s32 216, %v1857_v31  ;;  %v554_v34 = vadd.s32 %v1862_v33, %v521_v54 }
 0x102   : > { %v713_v17 = vsel %vm584_vm5, %v2110_v43, 0.0  ;;  %vm586_vm7 = vcmp.lt.s32.totalorder %v552_v28, 768  ;;  %v2111_v45 = vmax.f32 %v1730_v59, 0.0  ;;  %v524_v57 = vadd.s32 224, %v1857_v31 }
 0x103   : > { %v737_v9 = vadd.f32 %v736_v39, %v705_v25  ;;  %v555_v41 = vadd.s32 %v1862_v33, %v522_v55  ;;  %vm587_vm8 = vcmp.lt.s32.totalorder %v553_v32, 768  ;;  %v2112_v46 = vmax.f32 %v1733_v60, 0.0 }
 0x104   : > { %v714_v15 = vsel %vm585_vm6, %v2111_v45, 0.0  ;;  %v525_v58 = vadd.s32 232, %v1857_v31  ;;  %v556_v6 = vadd.s32 %v1862_v33, %v523_v56  ;;  %vm588_vm9 = vcmp.lt.s32.totalorder %v554_v34, 768 }
 0x105   : > { %v738_v7 = vadd.f32 %v737_v9, %v706_v61  ;;  %v715_v18 = vsel %vm586_vm7, %v2112_v46, 0.0  ;;  %v2113_v47 = vmax.f32 %v1736_v62, 0.0  ;;  %v526_v59 = vadd.s32 240, %v1857_v31 }
 0x106   : > { %v557_v39 = vadd.s32 %v1862_v33, %v524_v57  ;;  %vm589_vm10 = vcmp.lt.s32.totalorder %v555_v41, 768  ;;  %v2114_v48 = vmax.f32 %v1739_v63, 0.0  ;;  %v527_v60 = vadd.s32 248, %v1857_v31 }
 0x107   : > { %v739_v38 = vadd.f32 %v738_v7, %v707_v44  ;;  %v716_v19 = vsel %vm587_vm8, %v2113_v47, 0.0  ;;  %v558_v9 = vadd.s32 %v1862_v33, %v525_v58  ;;  %vm590_vm11 = vcmp.lt.s32.totalorder %v556_v6, 768 }
 0x108   : > { %v717_v20 = vsel %vm588_vm9, %v2114_v48, 0.0  ;;  %v2115_v44 = vmax.f32 %v1742_v0, 0.0  ;;  %v559_v62 = vadd.s32 %v1862_v33, %v526_v59  ;;  %vm591_vm12 = vcmp.lt.s32.totalorder %v557_v39, 768 }
 0x109   : > { %v740_v35 = vadd.f32 %v739_v38, %v708_v40  ;;  %v2116_v7 = vmax.f32 %v1745_v1, 0.0  ;;  %v560_v40 = vadd.s32 %v1862_v33, %v527_v60  ;;  %vm592_vm13 = vcmp.lt.s32.totalorder %v558_v9, 768 }
 0x10a   : > { %v718_v52 = vsel %vm589_vm10, %v2115_v44, 0.0  ;;  %v2117_v31 = vmax.f32 %v1748_v2, 0.0  ;;  %vm593_vm14 = vcmp.lt.s32.totalorder %v559_v62, 768  ;;  %v2118_v38 = vmax.f32 %v1751_v3, 0.0 }
 0x10b   : > { %v741_v36 = vadd.f32 %v740_v35, %v709_v11  ;;  %v719_v10 = vsel %vm590_vm11, %v2116_v7, 0.0  ;;  %vm594_vm15 = vcmp.lt.s32.totalorder %v560_v40, 768  ;;  %v2119_v11 = vmax.f32 %v1754_v4, 0.0 }
 0x10c   : > { %v720_v53 = vsel %vm591_vm12, %v2117_v31, 0.0  ;;  %v721_v0 = vsel %vm592_vm13, %v2118_v38, 0.0  ;;  %v2120_v1 = vmax.f32 %v1757_v5, 0.0 }
 0x10d   : > { %v742_v29 = vadd.f32 %v741_v36, %v710_v12  ;;  %v722_v49 = vsel %vm593_vm14, %v2119_v11, 0.0 }
 0x10e   : > { %v723_v35 = vsel %vm594_vm15, %v2120_v1, 0.0 }
 0x10f   : > { %v743_v26 = vadd.f32 %v742_v29, %v711_v13 }
 0x111   : > { %v744_v24 = vadd.f32 %v743_v26, %v712_v14 }
 0x113   : > { %v745_v51 = vadd.f32 %v744_v24, %v713_v17 }
 0x115   : > { %v746_v25 = vadd.f32 %v745_v51, %v714_v15 }
 0x117   : > { %v747_v61 = vadd.f32 %v746_v25, %v715_v18 }
 0x119   : > { %v748_v42 = vadd.f32 %v747_v61, %v716_v19 }
 0x11b   : > { %v749_v21 = vadd.f32 %v748_v42, %v717_v20 }
 0x11d   : > { %v750_v63 = vadd.f32 %v749_v21, %v718_v52 }
 0x11f   : > { %v751_v22 = vadd.f32 %v750_v63, %v719_v10 }
 0x121   : > { %v752_v16 = vadd.f32 %v751_v22, %v720_v53 }
 0x123   : > { %v753_v8 = vadd.f32 %v752_v16, %v721_v0 }
 0x125   : > { %v754_v33 = vadd.f32 %v753_v8, %v722_v49 }
 0x127   : > { %v755_v23 = vadd.f32 %v754_v33, %v723_v35 }
 0x129   : > { %v756_v12 = vrot.slane %v755_v23, 4 }
 0x12b   : > { %v757_v50 = vadd.f32 %v756_v12, %v755_v23 }
 0x12d   : > { %v758_v2 = vrot.slane %v757_v50, 2 }
 0x12f   : > { %v759_v27 = vadd.f32 %v758_v2, %v757_v50 }
 0x131   : > { %v760_v36 = vrot.slane %v759_v27, 1 }
 0x133   : > { %v761_v13 = vadd.f32 %v760_v36, %v759_v27 }
 0x135   : > { %v762_v3 = vadd.f32 %v761_v13, %v724_v30 }
 0x137   : > { %763 = vst [vmem:[#allocation2] sm:$0x1] %v762_v3 }
 0x138 PF: > { %p914_p4 = scmp.ne.s32.totalorder %s1202_s20, 1 }
 0x139   : > { %v1225_v5 = vmov (!%p914_p4), 0.0  }
 0x13a   : > { %767 = sbr.rel (%p914_p4) target bundleno = 321 (0x141), region = 56  ;;  %768 = vst [vmem:[%s1480_s5] sm:$0xff] (!%p914_p4), %v1225_v5 }
 0x13e   : > { %v769_v4 = vld [vmem:[#allocation2] sm:$0x1] (!%p914_p4) }
 0x13f   : > { %770 = vst [vmem:[%s1480_s5] sm:$0x1] (!%p914_p4), %v769_v4 }
 0x141 PF: > { %s916_s26 = sshll.u32 %s1206_s0, 7  ;;  %s785_s30 = sshll.u32 %s1480_s5, 4  ;;  %s786_s30 = int_to_ptr.vmem [resolvable:$true] %s785_s30 }
 0x142   : > { %s1998_s9 = scalar_lea.hbm %s2060_s3, %s916_s26  ;;  %s772_s20 = scalar_lea.sflag [#allocation6], %s263_s1 }
 0x143   : > { %s1092_s7 = scalar_lea.vmem %s786_s30, 128  ;;  %p2121_p13 = scmp.ne.s32.totalorder %s2087_s13, 0 }
 0x144   : > { %p1093_p12 = scmp.ne.s32.totalorder %s786_s30, %s1092_s7  ;;  %s1226_s24 = smov [#allocation9]  }
 0x145   : > { %s1096_s28 = sshll.u32 %s1226_s24, 4  ;;  %s1097_s28 = int_to_ptr.vmem [resolvable:$false] %s1096_s28 }
 0x146   : > { %p1094_p2 = pnand %p1093_p12, %p2121_p13  ;;  %s1098_s11 = scalar_lea.vmem %s1097_s28, 256 }
 0x147   : > { %p1099_p0 = scmp.lt.s32.totalorder %s786_s30, %s1097_s28  ;;  %p1100_p1 = scmp.lt.s32.totalorder %s1098_s11, %s1092_s7 }
 0x148   : > { %p1095_p3 = pneg %p1094_p2 }
 0x149   : > { %p1101_p7 = por %p1100_p1, %p1099_p0 }
 0x14b   : > { %p1102_p10 = pnand %p1101_p7, %p1095_p3 }
 0x14d   : > { %1105 = shalt.err (!%p1102_p10)
}
 0x14e   : > { %s1106_s0 = scalar_lea.hbm %s1998_s9, 128  ;;  %s1110_s5 = scalar_lea.hbm %s2060_s3, 256 }
 0x14f   : > { %p1107_p5 = scmp.ne.s32.totalorder %s1998_s9, %s1106_s0  ;;  %p1111_p8 = scmp.lt.u32.totalorder %s1998_s9, %s2060_s3 }
 0x150   : > { %p1112_p11 = scmp.lt.u32.totalorder %s1110_s5, %s1106_s0  ;;  %p1114_p12 = scmp.lt.u32.totalorder %s1106_s0, %s1998_s9 }
 0x151   : > { %p1108_p9 = pnand %p1107_p5, %p2121_p13 }
 0x152   : > { %p1113_p4 = por %p1112_p11, %p1111_p8 }
 0x153   : > { %p1109_p6 = pneg %p1108_p9 }
 0x154   : > { %p1115_p2 = por %p1114_p12, %p1113_p4 }
 0x156   : > { %p1116_p3 = pnand %p1115_p2, %p1109_p6 }
 0x158   : > { %1119 = shalt.err (!%p1116_p3)
}
 0x159   : > { %925 = dma.vmem_to_hbm [thread:$0]  (%p2121_p13), %s786_s30, 128, %s1998_s9, %s772_s20  }
 0x15a PF: > { %p939_p0 = scmp.ge.s32.totalorder %s1218_s23, 2  ;;  %s797_s4 = sand.u32 1, %s1178_s14  }
 0x15b   : > { %p2122_p1 = scmp.ne.s32.totalorder %s2088_s17, 0  ;;  %s798_s6 = scalar_lea.sflag [#allocation6], %s797_s4 }
 0x15d   : > { %p935_p7 = pnand %p939_p0, %p2122_p1 }
 0x15f   : > { %1173 = dma.done.wait (!%p935_p7), %s798_s6, 128  }
 0x160   : > { %1175 = vsyncadd (!%p935_p7), %s798_s6, 4294967168  ;;  %s23_s23 = sadd.s32 1, %s1218_s23   ;;  %s2123_s20 = sld [smem:[#allocation13_spill]] }
 0x161   : > { %p20_p10 = scmp.ge.s32.totalorder %s23_s23, 6   ;;  %s2124_s0 = sld [smem:[#allocation14_spill]] }
 0x162   : > { %s2125_s21 = sld [smem:[#allocation15_spill]]  ;;  %s2126_s22 = sld [smem:[#allocation16_spill]] }
 0x163   : > { %s2127_s14 = smov %s1182_s15  ;;  %s2128_s15 = smov %s1186_s16 }
 0x164   : > { %s2129_s16 = smov %s1340_s10  ;;  %s2130_s17 = smov %s1194_s18 }
 0x165   : > { %s2131_s18 = smov %s1198_s19  ;;  %s2132_s19 = smov %s1352_s12 }
 0x166   :  { %22 = sbr.rel (!%p20_p10) target bundleno = 14 (0xe), region = 106 }
 0x16d   :  { %803 = vsyncpa [#allocation5], 1 }
 0x16e   :  { %805 = vsyncpa [#allocation5 + $0x1], 1 }
 0x16f   :  { %806 = vsyncpa [#allocation8], 1 }
 0x170   :  { %808 = vsyncpa [#allocation8 + $0x1], 1 }
 0x171   :  { %809 = vsyncpa [#allocation6], 1 }
 0x172   :  { %811 = vsyncpa [#allocation6 + $0x1], 1 }

</bundles_post_ra>
